<compile_context>
chip_gen: v7x
topology: tpu7x:2x2x1
jax: 0.10.0
libtpu: 0.0.40
codegen_flags: <defaults>
</compile_context>

<pallas_src>
import functools

import jax
import jax.numpy as jnp
from jax.experimental import pallas as pl
from jax.experimental.pallas import tpu as pltpu


def _focal_loss_kernel(logits_ref, labels_ref, out_ref, acc_ref, *,
                       alpha, gamma):
    # logits_ref: (TILE_B, C) float  -- natural HBM layout, no host transpose
    # labels_ref: (1, TILE_B) int32  -- -1 marks padded / invalid columns
    # out_ref:    (1, 1, 128) f32    -- per-core partial sum, lane-broadcast
    # acc_ref:    (1, TILE_B) f32 VMEM scratch, running per-column sums
    i = pl.program_id(1)

    @pl.when(i == 0)
    def _():
        acc_ref[...] = jnp.zeros_like(acc_ref)

    # In-kernel relayout to lane-dense (C, TILE_B): batch on the 128-lane
    # axis; the class reductions become a small 3-vreg cross-sublane reduce
    # and the wide exp touches ~5x fewer vregs than the natural layout.
    x = jnp.transpose(logits_ref[...].astype(jnp.float32))       # (C, TB)
    labels = labels_ref[...]                                     # (1, TB)
    C, TB = x.shape

    # Numerically stable softmax pieces (reductions over the sublane axis).
    m = jnp.max(x, axis=0, keepdims=True)                        # (1, TB)
    shifted = x - m                                              # (C, TB)
    e = jnp.exp(shifted)                                         # only wide EUP op
    s = jnp.sum(e, axis=0, keepdims=True)                        # (1, TB)

    # Label select folded into a single where (no f32 one-hot materialized).
    class_ids = jax.lax.broadcasted_iota(jnp.int32, (C, TB), 0)
    shifted_t = jnp.sum(jnp.where(class_ids == labels, shifted, 0.0),
                        axis=0, keepdims=True)                   # (1, TB)
    valid = jnp.logical_and(labels >= 0, labels < C)             # (1, TB) bool

    # Focal math only on the (1, TB) label-selected vector.
    log_p_t = shifted_t - jnp.log(s)                             # log softmax @ label
    p_t = jnp.exp(log_p_t)
    q = 1.0 - p_t

    g = float(gamma)
    if g.is_integer() and 0 <= g <= 8:
        focal = jnp.ones_like(q)
        for _ in range(int(g)):                                  # VPU multiplies
            focal = focal * q
    else:
        focal = jnp.power(jnp.maximum(q, 0.0), g)                # clamp: avoid NaN

    # where (not multiply) so garbage tail columns cannot leak NaN/Inf.
    loss = jnp.where(valid, (-alpha) * focal * log_p_t, 0.0)     # (1, TB)
    acc_ref[...] += loss                                         # lane-wise VPU add

    @pl.when(i == pl.num_programs(1) - 1)
    def _():
        partial = jnp.sum(acc_ref[...], axis=1, keepdims=True)   # (1, 1) once/core
        out_ref[...] = jnp.broadcast_to(partial.reshape(1, 1, 1), (1, 1, 128))


def focal_loss(logits, labels, *, alpha=1.0, gamma=2.0, num_classes=19,
               tile_b=8192):
    """logits: (B, num_classes) float; labels: (B,) int. Returns scalar f32."""
    B, C = logits.shape
    assert C == num_classes

    labels2d = labels.astype(jnp.int32).reshape(1, B)

    if B <= tile_b:
        tb = B
        n_tiles = 1
    else:
        tb = tile_b
        assert tb % 128 == 0, "tile_b must be a multiple of 128"
        n_tiles = (B + tb - 1) // tb

    # Two-way "parallel" split of the batch tiles (occupies both v7x TCs;
    # harmless sequential on v5e/v6e). Extra iterations re-read a valid logits
    # tile (index wrapped with % n_tiles) but see all -1 labels -> contribute 0.
    n_cores = 2 if n_tiles >= 2 else 1
    n_inner = (n_tiles + n_cores - 1) // n_cores
    total_tiles = n_cores * n_inner
    padded_b = total_tiles * tb
    if padded_b != B:
        # Only the tiny labels row is padded; logits stay untouched in HBM.
        labels2d = jnp.pad(labels2d, ((0, 0), (0, padded_b - B)),
                           constant_values=-1)

    kernel = functools.partial(_focal_loss_kernel,
                               alpha=float(alpha), gamma=float(gamma))

    logits_map = lambda p, i: ((p * n_inner + i) % n_tiles, 0)
    labels_map = lambda p, i: (0, p * n_inner + i)

    partials = pl.pallas_call(
        kernel,
        out_shape=jax.ShapeDtypeStruct((n_cores, 1, 128), jnp.float32),
        grid=(n_cores, n_inner),
        in_specs=[
            pl.BlockSpec((tb, C), logits_map),     # natural (TILE_B, C) block
            pl.BlockSpec((1, tb), labels_map),
        ],
        out_specs=pl.BlockSpec((1, 1, 128), lambda p, i: (p, 0, 0)),
        scratch_shapes=[pltpu.VMEM((1, tb), jnp.float32)],
        compiler_params=pltpu.CompilerParams(
            dimension_semantics=("parallel", "arbitrary"),
            vmem_limit_bytes=32 * 1024 * 1024,
        ),
    )(logits, labels2d)

    # Combine the per-core partial sums; mean over the true batch size.
    return jnp.sum(partials[:, 0, 0]) / B


def _focal_loss_ref(logits, labels, *, alpha=1.0, gamma=2.0, num_classes=19):
    one_hot = jnp.eye(num_classes, dtype=jnp.float32)[labels]
    probs = jax.nn.softmax(logits.astype(jnp.float32), axis=1)
    log_p = jnp.log(probs)
    loss = -alpha * (1.0 - probs) ** gamma * log_p
    return jnp.mean(jnp.sum(loss * one_hot, axis=1))


if __name__ == "__main__":
    num_classes = 19

    key = jax.random.PRNGKey(0)
    k_logits, k_labels, k_logits2, k_labels2 = jax.random.split(key, 4)

    # Small shape matching the module spec: logits (B, C), labels (B,).
    batch = 8
    logits = jax.random.normal(k_logits, (batch, num_classes), dtype=jnp.float32)
    labels = jax.random.randint(k_labels, (batch,), 0, num_classes, dtype=jnp.int32)

    out = jax.block_until_ready(
        focal_loss(logits, labels, alpha=1.0, gamma=2.0, num_classes=num_classes))
    ref = _focal_loss_ref(logits, labels, alpha=1.0, gamma=2.0,
                          num_classes=num_classes)
    assert jnp.allclose(out, ref, atol=1e-5, rtol=1e-5), (out, ref)

    # Exercise the multi-tile + ragged-tail + 2-way-split accumulation path.
    batch2 = 300
    logits2 = jax.random.normal(k_logits2, (batch2, num_classes), dtype=jnp.float32)
    labels2 = jax.random.randint(k_labels2, (batch2,), 0, num_classes, dtype=jnp.int32)
    out2 = jax.block_until_ready(
        focal_loss(logits2, labels2, num_classes=num_classes, tile_b=128))
    ref2 = _focal_loss_ref(logits2, labels2, num_classes=num_classes)
    assert jnp.allclose(out2, ref2, atol=1e-5, rtol=1e-5), (out2, ref2)

    print("KERNEL_OK")
</pallas_src>

<mosaic_0001>
module attributes {stable_mosaic.version = 11 : i64} {
  func.func @_focal_loss_kernel(%arg0: i32, %arg1: i32, %arg2: memref<8x19xf32, #tpu.memory_space<vmem>>, %arg3: memref<1x8xi32, #tpu.memory_space<vmem>>, %arg4: memref<1x1x128xf32, #tpu.memory_space<vmem>>, %arg5: memref<1x8xf32, #tpu.memory_space<vmem>>) attributes {dimension_semantics = [#tpu.dimension_semantics<parallel>, #tpu.dimension_semantics<arbitrary>], iteration_bounds = array<i64: 1, 1>, scalar_prefetch = 0 : i64, scratch_operands = 1 : i64, tpu.core_type = #tpu.core_type<tc>, window_params = [{transform_indices = @transform_0, window_bounds = array<i64: 8, 19>}, {transform_indices = @transform_1, window_bounds = array<i64: 1, 8>}, {transform_indices = @transform_2, window_bounds = array<i64: 1, 1, 128>}]} {
    %c0_i32 = arith.constant 0 : i32
    %0 = arith.cmpi eq, %arg1, %c0_i32 : i32
    %1 = arith.extui %0 : i1 to i32
    %c0_i32_0 = arith.constant 0 : i32
    %2 = arith.cmpi ne, %1, %c0_i32_0 : i32
    scf.if %2 {
      %cst_18 = arith.constant 0.000000e+00 : f32
      %44 = vector.broadcast %cst_18 : f32 to vector<1x8xf32>
      %c0_19 = arith.constant 0 : index
      %c0_20 = arith.constant 0 : index
      %45 = vector.load %arg5[%c0_19, %c0_20] : memref<1x8xf32, #tpu.memory_space<vmem>>, vector<1x8xf32>
      tpu.vector_store %arg5[%c0_19, %c0_20], %44 {strides = array<i32>} : memref<1x8xf32, #tpu.memory_space<vmem>>, vector<1x8xf32>,
    } else {
    }
    %c0 = arith.constant 0 : index
    %c0_1 = arith.constant 0 : index
    %3 = vector.load %arg2[%c0, %c0_1] : memref<8x19xf32, #tpu.memory_space<vmem>>, vector<8x19xf32>
    %4 = tpu.transpose %3, [1, 0] : vector<8x19xf32> -> vector<19x8xf32>
    %c0_2 = arith.constant 0 : index
    %c0_3 = arith.constant 0 : index
    %5 = vector.load %arg3[%c0_2, %c0_3] : memref<1x8xi32, #tpu.memory_space<vmem>>, vector<1x8xi32>
    %cst = arith.constant dense<0xFF800000> : vector<8xf32>
    %6 = vector.multi_reduction <maximumf>, %4, %cst [0] : vector<19x8xf32> to vector<8xf32>
    %7 = vector.shape_cast %6 : vector<8xf32> to vector<1x8xf32>
    %8 = vector.broadcast %7 : vector<1x8xf32> to vector<19x8xf32>
    %9 = arith.subf %4, %8 : vector<19x8xf32>
    %10 = math.exp %9 : vector<19x8xf32>
    %cst_4 = arith.constant dense<0.000000e+00> : vector<8xf32>
    %11 = vector.multi_reduction <add>, %10, %cst_4 [0] : vector<19x8xf32> to vector<8xf32>
    %12 = vector.shape_cast %11 : vector<8xf32> to vector<1x8xf32>
    %13 = tpu.iota {dimensions = array<i32: 0>} : vector<19x8xi32>
    %14 = vector.broadcast %5 : vector<1x8xi32> to vector<19x8xi32>
    %15 = arith.cmpi eq, %13, %14 : vector<19x8xi32>
    %cst_5 = arith.constant 0.000000e+00 : f32
    %16 = vector.broadcast %cst_5 : f32 to vector<19x8xf32>
    %17 = arith.select %15, %9, %16 : vector<19x8xi1>, vector<19x8xf32>
    %cst_6 = arith.constant dense<0.000000e+00> : vector<8xf32>
    %18 = vector.multi_reduction <add>, %17, %cst_6 [0] : vector<19x8xf32> to vector<8xf32>
    %19 = vector.shape_cast %18 : vector<8xf32> to vector<1x8xf32>
    %c0_i32_7 = arith.constant 0 : i32
    %20 = vector.broadcast %c0_i32_7 : i32 to vector<1x8xi32>
    %21 = arith.cmpi sge, %5, %20 : vector<1x8xi32>
    %c19_i32 = arith.constant 19 : i32
    %22 = vector.broadcast %c19_i32 : i32 to vector<1x8xi32>
    %23 = arith.cmpi slt, %5, %22 : vector<1x8xi32>
    %24 = arith.andi %21, %23 : vector<1x8xi1>
    %25 = math.log %12 : vector<1x8xf32>
    %26 = arith.subf %19, %25 : vector<1x8xf32>
    %27 = math.exp %26 : vector<1x8xf32>
    %cst_8 = arith.constant 1.000000e+00 : f32
    %28 = vector.broadcast %cst_8 : f32 to vector<1x8xf32>
    %29 = arith.subf %28, %27 : vector<1x8xf32>
    %cst_9 = arith.constant 1.000000e+00 : f32
    %30 = vector.broadcast %cst_9 : f32 to vector<1x8xf32>
    %31 = arith.mulf %30, %29 : vector<1x8xf32>
    %32 = arith.mulf %31, %29 : vector<1x8xf32>
    %cst_10 = arith.constant -1.000000e+00 : f32
    %33 = vector.broadcast %cst_10 : f32 to vector<1x8xf32>
    %34 = arith.mulf %33, %32 : vector<1x8xf32>
    %35 = arith.mulf %34, %26 : vector<1x8xf32>
    %cst_11 = arith.constant 0.000000e+00 : f32
    %36 = vector.broadcast %cst_11 : f32 to vector<1x8xf32>
    %37 = arith.select %24, %35, %36 : vector<1x8xi1>, vector<1x8xf32>
    %c0_12 = arith.constant 0 : index
    %c0_13 = arith.constant 0 : index
    %38 = vector.load %arg5[%c0_12, %c0_13] : memref<1x8xf32, #tpu.memory_space<vmem>>, vector<1x8xf32>
    %39 = arith.addf %38, %37 : vector<1x8xf32>
    %c0_14 = arith.constant 0 : index
    %c0_15 = arith.constant 0 : index
    %40 = vector.load %arg5[%c0_14, %c0_15] : memref<1x8xf32, #tpu.memory_space<vmem>>, vector<1x8xf32>
    tpu.vector_store %arg5[%c0_14, %c0_15], %39 {strides = array<i32>} : memref<1x8xf32, #tpu.memory_space<vmem>>, vector<1x8xf32>,
    %c0_i32_16 = arith.constant 0 : i32
    %41 = arith.cmpi eq, %arg1, %c0_i32_16 : i32
    %42 = arith.extui %41 : i1 to i32
    %c0_i32_17 = arith.constant 0 : i32
    %43 = arith.cmpi ne, %42, %c0_i32_17 : i32
    scf.if %43 {
      %c0_18 = arith.constant 0 : index
      %c0_19 = arith.constant 0 : index
      %44 = vector.load %arg5[%c0_18, %c0_19] : memref<1x8xf32, #tpu.memory_space<vmem>>, vector<1x8xf32>
      %cst_20 = arith.constant dense<0.000000e+00> : vector<1xf32>
      %45 = vector.multi_reduction <add>, %44, %cst_20 [1] : vector<1x8xf32> to vector<1xf32>
      %46 = vector.shape_cast %45 : vector<1xf32> to vector<1x1xf32>
      %47 = vector.shape_cast %46 : vector<1x1xf32> to vector<1x1x1xf32>
      %48 = vector.shape_cast %47 : vector<1x1x1xf32> to vector<1x1x1xf32>
      %49 = vector.broadcast %48 : vector<1x1x1xf32> to vector<1x1x128xf32>
      %c0_21 = arith.constant 0 : index
      %c0_22 = arith.constant 0 : index
      %c0_23 = arith.constant 0 : index
      %50 = vector.load %arg4[%c0_21, %c0_22, %c0_23] : memref<1x1x128xf32, #tpu.memory_space<vmem>>, vector<1x1x128xf32>
      tpu.vector_store %arg4[%c0_21, %c0_22, %c0_23], %49 {strides = array<i32>} : memref<1x1x128xf32, #tpu.memory_space<vmem>>, vector<1x1x128xf32>,
    } else {
    }
    return
  }
  func.func @transform_0(%arg0: i32, %arg1: i32) -> (i32, i32) {
    %c1_i32 = arith.constant 1 : i32
    %0 = arith.muli %arg0, %c1_i32 : i32
    %1 = arith.addi %0, %arg1 : i32
    %c1_i32_0 = arith.constant 1 : i32
    %c0_i32 = arith.constant 0 : i32
    %2 = arith.cmpi eq, %c1_i32_0, %c0_i32 : i32
    %c1_i32_1 = arith.constant 1 : i32
    %3 = arith.select %2, %c1_i32_1, %c1_i32_0 : i32
    %4 = arith.remsi %1, %3 : i32
    %c0_i32_2 = arith.constant 0 : i32
    %5 = arith.cmpi ne, %4, %c0_i32_2 : i32
    %c0_i32_3 = arith.constant 0 : i32
    %6 = arith.cmpi slt, %4, %c0_i32_3 : i32
    %c0_i32_4 = arith.constant 0 : i32
    %7 = arith.cmpi slt, %3, %c0_i32_4 : i32
    %8 = arith.xori %6, %7 : i1
    %9 = arith.andi %8, %5 : i1
    %10 = arith.addi %4, %3 : i32
    %11 = arith.select %9, %10, %4 : i32
    %c0_i32_5 = arith.constant 0 : i32
    %c0_i32_6 = arith.constant 0 : i32
    return %11, %c0_i32_5 : i32, i32
  }
  func.func @transform_1(%arg0: i32, %arg1: i32) -> (i32, i32) {
    %c1_i32 = arith.constant 1 : i32
    %0 = arith.muli %arg0, %c1_i32 : i32
    %1 = arith.addi %0, %arg1 : i32
    %c0_i32 = arith.constant 0 : i32
    %c0_i32_0 = arith.constant 0 : i32
    return %c0_i32, %1 : i32, i32
  }
  func.func @transform_2(%arg0: i32, %arg1: i32) -> (i32, i32, i32) {
    %c0_i32 = arith.constant 0 : i32
    %c0_i32_0 = arith.constant 0 : i32
    %c0_i32_1 = arith.constant 0 : i32
    return %arg0, %c0_i32, %c0_i32_0 : i32, i32, i32
  }
}

</mosaic_0001>

<bundles_post_ra>
// kernel: tpu_custom_call.1
= control target key start
LH: loop header
LB: loop body
LE: loop exit
PB: predicated region body
PF: predicated region fallthrough
CT: control target
= control target key end

     0   :  { %7 = vsyncpa [#allocation4], 0  ;;  %s297_s0 = inlined_call_operand.hbm [shape: f32[8,19], index: 0, kind: input, shape index: {}]   ;;  %s298_s1 = inlined_call_operand.vmem [shape: s32[1,8], index: 1, kind: input, shape index: {}]   ;;  %s299_s2 = inlined_call_operand.hbm [shape: f32[1,1,128], index: 2, kind: output, shape index: {}]  }
   0x1   :  { %8 = vsyncpa [#allocation5], 0  ;;  %s240_s9 = smov [#allocation3]   ;;  %s192_s13 = scalar_lea.hbm %s297_s0, 128 }
   0x2   :  { %s15_s10 = sshll.u32 %s240_s9, 4  ;;  %p193_p0 = scmp.ne.s32.totalorder %s297_s0, %s192_s13  ;;  %s16_s10 = int_to_ptr.vmem [resolvable:$true] %s15_s10 }
   0x3   :  { %p196_p1 = scmp.lt.u32.totalorder %s192_s13, %s297_s0 }
   0x5   :  { %p198_p2 = pnand %p196_p1, %p193_p0 }
   0x7   :  { %201 = shalt.err (!%p198_p2)
}
   0x8   :  { %s202_s18 = scalar_lea.vmem %s16_s10, 128  ;;  %p207_p4 = scmp.lt.s32.totalorder %s16_s10, %s16_s10 }
   0x9   :  { %p203_p3 = scmp.ne.s32.totalorder %s16_s10, %s202_s18  ;;  %p208_p5 = scmp.lt.s32.totalorder %s202_s18, %s202_s18 }
   0xb   :  { %p209_p6 = por %p208_p5, %p207_p4 }
   0xd   :  { %p210_p7 = pnand %p209_p6, %p203_p3 }
   0xf   :  { %213 = shalt.err (!%p210_p7)
}
  0x10   :  { %18 = dma.hbm_to_vmem [thread:$0]  %s297_s0, 128, %s16_s10, [#allocation4]  }
  0x11   :  { %236 = dma.done.wait [#allocation4], 128  }
  0x12   :  { %237 = vsyncadd [#allocation4], 4294967168  ;;  %v44_v0 = vld [vmem:[#allocation3] sm:$0xff]  ;;  %vm42_vm0 = vcmask 57344   ;;  %v241_v1 = vmov 0.0   ;;  %vm78_vm1 = vcmask 64512   ;;  %v111_v12 = vlaneseq }
  0x13   :  { %45 = vxpose.xlu0.b32.start.end [1/1] (short) (narrow) %v44_v0, 24  ;;  %43 = vst.msk [vmem:[#allocation2] sm:$0x1] %vm42_vm0, %v241_v1  ;;  %vm81_vm2 = vcmask 59392   ;;  %v77_v19 = vld [vmem:[%s298_s1] sm:$0x1] }
  0x14   :  { %v112_v15 = vshrl.u32 %v111_v12, 7  ;;  %vm136_vm6 = vcmp.ge.s32.totalorder %v77_v19, 0  ;;  %vm137_vm7 = vcmp.lt.s32.totalorder %v77_v19, 19  ;;  %s242_s1 = smov [#allocation6]  }
  0x15   :  { %vm138_vm8 = vmand %vm136_vm6, %vm137_vm7  ;;  %s167_s22 = sshll.u32 %s242_s1, 4  ;;  %s168_s22 = int_to_ptr.vmem [resolvable:$true] %s167_s22 }
  0x16   :  { %v117_v18 = vsub.s32 0, %v112_v15  ;;  %v113_v26 = vadd.s32 8, %v112_v15  ;;  %v114_v28 = vadd.s32 16, %v112_v15  ;;  %s214_s23 = scalar_lea.vmem %s168_s22, 16  ;;  %s218_s24 = scalar_lea.vmem %s168_s22, 32 }
  0x17   :  { %p215_p8 = scmp.ne.s32.totalorder %s168_s22, %s214_s23  ;;  %p219_p9 = scmp.lt.s32.totalorder %s168_s22, %s168_s22 }
  0x18   :  { %v118_v27 = vrot.slane %v77_v19, %v117_v18  ;;  %p220_p10 = scmp.lt.s32.totalorder %s218_s24, %s214_s23 }
  0x1a   :  { %vm119_vm3 = vcmp.eq.s32.totalorder %v112_v15, %v118_v27  ;;  %vm120_vm4 = vcmp.eq.s32.totalorder %v113_v26, %v118_v27  ;;  %vm121_vm5 = vcmp.eq.s32.totalorder %v114_v28, %v118_v27  ;;  %p221_p11 = por %p220_p10, %p219_p9 }
  0x1c   :  { %p222_p12 = pnand %p221_p11, %p215_p8 }
  0x93   :  { %v61_v2 = vpop.trf.xlu0 }
  0x94   :  { %v79_v5 = vsel %vm78_vm1, %v61_v2, -inf }
  0x97   :  { %v62_v3 = vpop.trf.xlu0 }
  0x98   :  { %v80_v4 = vsel %vm78_vm1, %v62_v3, -inf }
  0x99   :  { %v83_v6 = vmax.f32 %v79_v5, %v80_v4 }
  0x9b   :  { %v63_v7 = vpop.trf.xlu0 }
  0x9c   :  { %v82_v8 = vsel %vm81_vm2, %v63_v7, -inf }
  0x9d   :  { %v84_v9 = vmax.f32 %v83_v6, %v82_v8 }
  0x9f   :  { %v85_v10 = vrot.slane %v84_v9, 4 }
  0xa1   :  { %v86_v11 = vmax.f32 %v84_v9, %v85_v10 }
  0xa3   :  { %v87_v13 = vrot.slane %v86_v11, 2 }
  0xa5   :  { %v88_v14 = vmax.f32 %v86_v11, %v87_v13 }
  0xa7   :  { %v89_v16 = vrot.slane %v88_v14, 1 }
  0xa9   :  { %v90_v17 = vmax.f32 %v88_v14, %v89_v16 }
  0xab   :  { %v91_v20 = vsub.f32 %v61_v2, %v90_v17  ;;  %v92_v21 = vsub.f32 %v62_v3, %v90_v17  ;;  %v93_v22 = vsub.f32 %v63_v7, %v90_v17  ;;  %v149_v2 = vld [vmem:[#allocation2] sm:$0x1] }
  0xad   :  { %v94_v23 = vmul.f32 1.442695, %v91_v20  ;;  %v96_v24 = vmul.f32 1.442695, %v92_v21  ;;  %v98_v25 = vmul.f32 1.442695, %v93_v22 }
  0xae   :  { %v122_v29 = vsel %vm119_vm3, %v91_v20, 0.0  ;;  %v123_v30 = vsel %vm120_vm4, %v92_v21, 0.0  ;;  %v124_v38 = vsel %vm121_vm5, %v93_v22, 0.0 }
  0xaf   :  { %182 = vpow2.f32 %v94_v23  ;;  %v125_v31 = vsel %vm78_vm1, %v122_v29, 0.0  ;;  %v126_v32 = vsel %vm78_vm1, %v123_v30, 0.0  ;;  %v128_v43 = vsel %vm81_vm2, %v124_v38, 0.0 }
  0xb0   :  { %184 = vpow2.f32 %v96_v24  ;;  %v127_v39 = vadd.f32 %v126_v32, %v125_v31 }
  0xb1   :  { %186 = vpow2.f32 %v98_v25 }
  0xb2   :  { %v129_v44 = vadd.f32 %v128_v43, %v127_v39 }
  0xb4   :  { %v130_v47 = vrot.slane %v129_v44, 4 }
  0xb6   :  { %v131_v50 = vadd.f32 %v130_v47, %v129_v44 }
  0xb8   :  { %v132_v53 = vrot.slane %v131_v50, 2 }
  0xb9   :  { %v183_v33 = vpop.eup %182 }
  0xba   :  { %v185_v34 = vpop.eup %184  ;;  %v100_v35 = vsel %vm78_vm1, %v183_v33, 0.0  ;;  %v133_v54 = vadd.f32 %v132_v53, %v131_v50 }
  0xbb   :  { %v187_v36 = vpop.eup %186  ;;  %v101_v37 = vsel %vm78_vm1, %v185_v34, 0.0 }
  0xbc   :  { %v102_v40 = vadd.f32 %v101_v37, %v100_v35  ;;  %v103_v41 = vsel %vm81_vm2, %v187_v36, 0.0  ;;  %v134_v55 = vrot.slane %v133_v54, 1 }
  0xbe   :  { %v104_v42 = vadd.f32 %v103_v41, %v102_v40  ;;  %v135_v57 = vadd.f32 %v134_v55, %v133_v54 }
  0xc0   :  { %v105_v45 = vrot.slane %v104_v42, 4 }
  0xc2   :  { %v106_v46 = vadd.f32 %v105_v45, %v104_v42 }
  0xc4   :  { %v107_v48 = vrot.slane %v106_v46, 2 }
  0xc6   :  { %v108_v49 = vadd.f32 %v107_v48, %v106_v46 }
  0xc8   :  { %v109_v51 = vrot.slane %v108_v49, 1 }
  0xca   :  { %v110_v52 = vadd.f32 %v109_v51, %v108_v49 }
  0xcc   :  { %188 = vlog2.f32 %v110_v52 }
  0xd6   :  { %v189_v56 = vpop.eup %188 }
  0xd7   :  { %v140_v58 = vmul.f32 0.6931472, %v189_v56 }
  0xd9   :  { %v141_v59 = vsub.f32 %v135_v57, %v140_v58 }
  0xdb   :  { %v142_v60 = vmul.f32 1.442695, %v141_v59 }
  0xdd   :  { %190 = vpow2.f32 %v142_v60 }
  0xe7   :  { %v191_v61 = vpop.eup %190 }
  0xe8   :  { %v144_v62 = vsub.f32 1.0, %v191_v61 }
  0xea   :  { %v145_v63 = vmul.f32 %v144_v62, %v144_v62 }
  0xec   :  { %v146_v0 = vmul.f32 -1.0, %v145_v63 }
  0xee   :  { %v147_v1 = vmul.f32 %v146_v0, %v141_v59 }
  0xf0   :  { %v148_v3 = vsel %vm138_vm8, %v147_v1, 0.0 }
  0xf1   :  { %v150_v4 = vadd.f32 %v149_v2, %v148_v3 }
  0xf3   :  { %152 = vst.msk [vmem:[#allocation2] sm:$0x1] %vm42_vm0, %v150_v4 }
  0xfa   :  { %v156_v5 = vld [vmem:[#allocation2] sm:$0x1] }
  0xfb   :  { %v157_v6 = vsel %vm42_vm0, %v156_v5, 0.0 }
  0xfc   :  { %158 = vadd.xlane.f32.xlu0 %v157_v6 }
 0x189   :  { %v159_v7 = vpop.xlane.xlu0 %158 }
 0x18a   :  { %160 = vst [vmem:[#allocation6] sm:$0x1] %v159_v7 }
 0x18b   :  { %225 = shalt.err (!%p222_p12)
}
 0x18c   :  { %s226_s27 = scalar_lea.hbm %s299_s2, 16 }
 0x18d   :  { %p227_p13 = scmp.ne.s32.totalorder %s299_s2, %s226_s27  ;;  %p230_p0 = scmp.lt.u32.totalorder %s226_s27, %s299_s2 }
 0x18f   :  { %p232_p1 = pnand %p230_p0, %p227_p13 }
 0x191   :  { %235 = shalt.err (!%p232_p1)
}
 0x192   :  { %170 = dma.vmem_to_hbm [thread:$0]  %s168_s22, 16, %s299_s2, [#allocation5]  }
 0x193   :  { %238 = dma.done.wait [#allocation5], 16  }
 0x194   :  { %239 = vsyncadd [#allocation5], 4294967280 }
 0x195   :  { %174 = vsyncpa [#allocation4], 1 }
 0x196   :  { %175 = vsyncpa [#allocation5], 1 }

</bundles_post_ra>
